<compile_context>
chip_gen: v7x
topology: tpu7x:2x2x1
jax: 0.10.0
libtpu: 0.0.40
codegen_flags: <defaults>
</compile_context>

<pallas_src>
import jax
import jax.numpy as jnp
from jax.experimental import pallas as pl
from jax.experimental.pallas import tpu as pltpu

_LANE = 512        # lane-dense last dim: large multiple of 128 -> unmasked stores
_ROW_ALIGN = 32    # uint8/bool native sublane tiling
_ROW_TILE = 512    # rows per grid step; 512x512 f32+f32+u8 ~ 2.25 MiB per step


def _lt_kernel(a_ref, b_ref, o_ref):
    # Elementwise less-than on the whole VMEM tile (VPU compare).
    o_ref[...] = (a_ref[...] < b_ref[...]).astype(o_ref.dtype)


def pallas_lt(a, b):
    """Elementwise a < b, matching torch.lt semantics (returns bool array)."""
    assert a.shape == b.shape, "broadcasting not needed for this example"
    orig_shape = a.shape
    n = int(a.size)

    a_flat = a.reshape(-1)
    b_flat = b.reshape(-1)

    # Pad the flat length up to a multiple of (LANE * ROW_ALIGN) so the slab is
    # (rows, LANE) with rows a multiple of 32 -> every vreg is full and stores
    # are unmasked. Padded elements are sliced off at the end.
    slab = _LANE * _ROW_ALIGN
    n_pad = pl.cdiv(n, slab) * slab
    if n_pad != n:
        pad = n_pad - n
        a_flat = jnp.pad(a_flat, (0, pad))
        b_flat = jnp.pad(b_flat, (0, pad))

    rows = n_pad // _LANE
    row_tile = min(_ROW_TILE, rows)       # rows is a multiple of 32
    num_tiles = pl.cdiv(rows, row_tile)

    a2 = a_flat.reshape(rows, _LANE)
    b2 = b_flat.reshape(rows, _LANE)

    cost = pl.CostEstimate(
        flops=n_pad,
        transcendentals=0,
        bytes_accessed=n_pad * (4 + 4 + 1),  # two f32 reads + one byte-wide write
    )

    def _call(out_dtype):
        return pl.pallas_call(
            _lt_kernel,
            out_shape=jax.ShapeDtypeStruct((rows, _LANE), out_dtype),
            grid=(num_tiles,),
            in_specs=[
                pl.BlockSpec((row_tile, _LANE), lambda i: (i, 0)),
                pl.BlockSpec((row_tile, _LANE), lambda i: (i, 0)),
            ],
            out_specs=pl.BlockSpec((row_tile, _LANE), lambda i: (i, 0)),
            compiler_params=pltpu.CompilerParams(
                dimension_semantics=("parallel",)
            ),
            cost_estimate=cost,
        )(a2, b2)

    try:
        out2 = _call(jnp.bool_)            # emit bool directly: no extra HBM pass
    except Exception:
        # Fallback if this Mosaic version rejects bool output memrefs.
        out2 = _call(jnp.uint8).astype(jnp.bool_)

    return out2.reshape(-1)[:n].reshape(orig_shape)


if __name__ == "__main__":
    key = jax.random.PRNGKey(0)
    k1, k2 = jax.random.split(key)

    # Small NCHW-ish shapes: batch=2, channels=4, spatial=16x16
    x0 = jax.random.normal(k1, (2, 4, 16, 16), dtype=jnp.float32)
    x1 = jax.random.normal(k2, (2, 4, 16, 16), dtype=jnp.float32)

    out = pallas_lt(x0, x1)
    jax.block_until_ready(out)

    ref = x0 < x1
    assert out.dtype == jnp.bool_
    assert out.shape == (2, 4, 16, 16)
    assert bool(jnp.all(out == ref))

    # Extra sanity: odd size (exercises padding path).
    y0 = jax.random.normal(k1, (3, 5, 129), dtype=jnp.float32)
    y1 = jax.random.normal(k2, (3, 5, 129), dtype=jnp.float32)
    out_y = pallas_lt(y0, y1)
    jax.block_until_ready(out_y)
    assert bool(jnp.all(out_y == (y0 < y1)))

    # Extra sanity: multi-tile grid with a partial last row block.
    z0 = jax.random.normal(k1, (1, 8, 256, 144), dtype=jnp.float32)
    z1 = jax.random.normal(k2, (1, 8, 256, 144), dtype=jnp.float32)
    out_z = pallas_lt(z0, z1)
    jax.block_until_ready(out_z)
    assert bool(jnp.all(out_z == (z0 < z1)))

    print("KERNEL_OK")
</pallas_src>

<mosaic_0001>
module attributes {stable_mosaic.version = 11 : i64} {
  func.func @_lt_kernel(%arg0: i32, %arg1: memref<32x512xf32, #tpu.memory_space<vmem>>, %arg2: memref<32x512xf32, #tpu.memory_space<vmem>>, %arg3: memref<32x512xi32, #tpu.memory_space<vmem>>) attributes {dimension_semantics = [#tpu.dimension_semantics<parallel>], iteration_bounds = array<i64: 1>, scalar_prefetch = 0 : i64, scratch_operands = 0 : i64, tpu.core_type = #tpu.core_type<tc>, window_params = [{transform_indices = @transform_0, window_bounds = array<i64: 32, 512>}, {transform_indices = @transform_1, window_bounds = array<i64: 32, 512>}, {transform_indices = @transform_2, window_bounds = array<i64: 32, 512>}]} {
    %c0 = arith.constant 0 : index
    %c0_0 = arith.constant 0 : index
    %0 = vector.load %arg1[%c0, %c0_0] : memref<32x512xf32, #tpu.memory_space<vmem>>, vector<32x512xf32>
    %c0_1 = arith.constant 0 : index
    %c0_2 = arith.constant 0 : index
    %1 = vector.load %arg2[%c0_1, %c0_2] : memref<32x512xf32, #tpu.memory_space<vmem>>, vector<32x512xf32>
    %2 = arith.cmpf olt, %0, %1 : vector<32x512xf32>
    %c0_3 = arith.constant 0 : index
    %c0_4 = arith.constant 0 : index
    %3 = vector.load %arg3[%c0_3, %c0_4] : memref<32x512xi32, #tpu.memory_space<vmem>>, vector<32x512xi32>
    %4 = arith.extui %2 : vector<32x512xi1> to vector<32x512xi32>
    %cst = arith.constant dense<0> : vector<32x512xi32>
    %5 = arith.cmpi ne, %3, %cst : vector<32x512xi32>
    tpu.vector_store %arg3[%c0_3, %c0_4], %4 {strides = array<i32>} : memref<32x512xi32, #tpu.memory_space<vmem>>, vector<32x512xi32>,
    return
  }
  func.func @transform_0(%arg0: i32) -> (i32, i32) {
    %c0_i32 = arith.constant 0 : i32
    %c0_i32_0 = arith.constant 0 : i32
    return %arg0, %c0_i32 : i32, i32
  }
  func.func @transform_1(%arg0: i32) -> (i32, i32) {
    %c0_i32 = arith.constant 0 : i32
    %c0_i32_0 = arith.constant 0 : i32
    return %arg0, %c0_i32 : i32, i32
  }
  func.func @transform_2(%arg0: i32) -> (i32, i32) {
    %c0_i32 = arith.constant 0 : i32
    %c0_i32_0 = arith.constant 0 : i32
    return %arg0, %c0_i32 : i32, i32
  }
}

module attributes {stable_mosaic.version = 11 : i64} {
  func.func @_lt_kernel(%arg0: i32, %arg1: memref<32x512xf32, #tpu.memory_space<vmem>>, %arg2: memref<32x512xf32, #tpu.memory_space<vmem>>, %arg3: memref<32x512xi8, #tpu.memory_space<vmem>>) attributes {dimension_semantics = [#tpu.dimension_semantics<parallel>], iteration_bounds = array<i64: 1>, scalar_prefetch = 0 : i64, scratch_operands = 0 : i64, tpu.core_type = #tpu.core_type<tc>, window_params = [{transform_indices = @transform_0, window_bounds = array<i64: 32, 512>}, {transform_indices = @transform_1, window_bounds = array<i64: 32, 512>}, {transform_indices = @transform_2, window_bounds = array<i64: 32, 512>}]} {
    %c0 = arith.constant 0 : index
    %c0_0 = arith.constant 0 : index
    %0 = vector.load %arg1[%c0, %c0_0] : memref<32x512xf32, #tpu.memory_space<vmem>>, vector<32x512xf32>
    %c0_1 = arith.constant 0 : index
    %c0_2 = arith.constant 0 : index
    %1 = vector.load %arg2[%c0_1, %c0_2] : memref<32x512xf32, #tpu.memory_space<vmem>>, vector<32x512xf32>
    %2 = arith.cmpf olt, %0, %1 : vector<32x512xf32>
    %3 = arith.extui %2 : vector<32x512xi1> to vector<32x512xi8>
    %c0_3 = arith.constant 0 : index
    %c0_4 = arith.constant 0 : index
    %4 = vector.load %arg3[%c0_3, %c0_4] : memref<32x512xi8, #tpu.memory_space<vmem>>, vector<32x512xi8>
    tpu.vector_store %arg3[%c0_3, %c0_4], %3 {strides = array<i32>} : memref<32x512xi8, #tpu.memory_space<vmem>>, vector<32x512xi8>,
    return
  }
  func.func @transform_0(%arg0: i32) -> (i32, i32) {
    %c0_i32 = arith.constant 0 : i32
    %c0_i32_0 = arith.constant 0 : i32
    return %arg0, %c0_i32 : i32, i32
  }
  func.func @transform_1(%arg0: i32) -> (i32, i32) {
    %c0_i32 = arith.constant 0 : i32
    %c0_i32_0 = arith.constant 0 : i32
    return %arg0, %c0_i32 : i32, i32
  }
  func.func @transform_2(%arg0: i32) -> (i32, i32) {
    %c0_i32 = arith.constant 0 : i32
    %c0_i32_0 = arith.constant 0 : i32
    return %arg0, %c0_i32 : i32, i32
  }
}

</mosaic_0001>

<bundles_post_ra>
// kernel: tpu_custom_call.1
= control target key start
LH: loop header
LB: loop body
LE: loop exit
PB: predicated region body
PF: predicated region fallthrough
CT: control target
= control target key end

     0   :  { %7 = vsyncpa [#allocation3], 0  ;;  %s286_s0 = inlined_call_operand.hbm [shape: f32[32,512], index: 0, kind: input, shape index: {}]   ;;  %s287_s1 = inlined_call_operand.hbm [shape: f32[32,512], index: 1, kind: input, shape index: {}]   ;;  %s288_s2 = inlined_call_operand.vmem [shape: s32[32,512], index: 2, kind: output, shape index: {}]  }
   0x1   :  { %8 = vsyncpa [#allocation5], 0  ;;  %s178_s9 = smov [#allocation2]   ;;  %s130_s13 = scalar_lea.hbm %s286_s0, 2048 }
   0x2   :  { %s14_s10 = sshll.u32 %s178_s9, 4  ;;  %p131_p0 = scmp.ne.s32.totalorder %s286_s0, %s130_s13  ;;  %s15_s10 = int_to_ptr.vmem [resolvable:$true] %s14_s10 }
   0x3   :  { %p134_p1 = scmp.lt.u32.totalorder %s130_s13, %s286_s0 }
   0x5   :  { %p136_p2 = pnand %p134_p1, %p131_p0 }
   0x7   :  { %139 = shalt.err (!%p136_p2)
}
   0x8   :  { %s140_s18 = scalar_lea.vmem %s15_s10, 2048  ;;  %p145_p4 = scmp.lt.s32.totalorder %s15_s10, %s15_s10 }
   0x9   :  { %p141_p3 = scmp.ne.s32.totalorder %s15_s10, %s140_s18  ;;  %p146_p5 = scmp.lt.s32.totalorder %s140_s18, %s140_s18 }
   0xb   :  { %p147_p6 = por %p146_p5, %p145_p4 }
   0xd   :  { %p148_p7 = pnand %p147_p6, %p141_p3 }
   0xf   :  { %151 = shalt.err (!%p148_p7)
}
  0x10   :  { %s179_s19 = smov 512   ;;  %s180_s20 = smov 32  }
  0x11   :  { %20 = dma.hbm_to_vmem [thread:$0]  %s286_s0, 2048, %s15_s10, [#allocation3], %s179_s19, %s179_s19, %s180_s20  }
  0x12   :  { %s181_s23 = smov [#allocation4]   ;;  %s152_s27 = scalar_lea.hbm %s287_s1, 2048 }
  0x13   :  { %s26_s24 = sshll.u32 %s181_s23, 4  ;;  %p153_p8 = scmp.ne.s32.totalorder %s287_s1, %s152_s27  ;;  %s27_s24 = int_to_ptr.vmem [resolvable:$true] %s26_s24 }
  0x14   :  { %p156_p9 = scmp.lt.u32.totalorder %s152_s27, %s287_s1 }
  0x16   :  { %p158_p10 = pnand %p156_p9, %p153_p8 }
  0x18   :  { %161 = shalt.err (!%p158_p10)
}
  0x19   :  { %s162_s4 = scalar_lea.vmem %s27_s24, 2048  ;;  %p167_p12 = scmp.lt.s32.totalorder %s27_s24, %s27_s24 }
  0x1a   :  { %p163_p11 = scmp.ne.s32.totalorder %s27_s24, %s162_s4  ;;  %p168_p13 = scmp.lt.s32.totalorder %s162_s4, %s162_s4 }
  0x1c   :  { %p169_p0 = por %p168_p13, %p167_p12 }
  0x1e   :  { %p170_p1 = pnand %p169_p0, %p163_p11 }
  0x20   :  { %173 = shalt.err (!%p170_p1)
}
  0x21   :  { %32 = dma.hbm_to_vmem [thread:$0]  %s287_s1, 2048, %s27_s24, [#allocation5], %s179_s19, %s179_s19, %s180_s20  }
  0x22   :  { %174 = dma.done.wait [#allocation3], 2048  }
  0x23   :  { %175 = vsyncadd [#allocation3], 4294965248 }
  0x24   :  { %176 = dma.done.wait [#allocation5], 2048  }
  0x25   :  { %177 = vsyncadd [#allocation5], 4294965248  ;;  %v39_v0 = vld [vmem:[#allocation2] sm:$0xff]  ;;  %v40_v2 = vld [vmem:[#allocation2 + $0x8] sm:$0xff]  ;;  %v182_v6 = vmov 0  }
  0x26   :  { %v55_v1 = vld [vmem:[#allocation4] sm:$0xff]  ;;  %v56_v3 = vld [vmem:[#allocation4 + $0x8] sm:$0xff]  ;;  %v41_v4 = vld [vmem:[#allocation2 + $0x10] sm:$0xff] }
  0x27   :  { %vm71_vm0 = vcmp.lt.f32.partialorder %v39_v0, %v55_v1  ;;  %v57_v5 = vld [vmem:[#allocation4 + $0x10] sm:$0xff]  ;;  %vm72_vm1 = vcmp.lt.f32.partialorder %v40_v2, %v56_v3  ;;  %v42_v8 = vld [vmem:[#allocation2 + $0x18] sm:$0xff]  ;;  %v43_v10 = vld [vmem:[#allocation2 + $0x20] sm:$0xff] }
  0x28   :  { %v87_v7 = vsel %vm71_vm0, 1, %v182_v6  ;;  %vm73_vm2 = vcmp.lt.f32.partialorder %v41_v4, %v57_v5  ;;  %v58_v9 = vld [vmem:[#allocation4 + $0x18] sm:$0xff]  ;;  %v88_v11 = vsel %vm72_vm1, 1, %v182_v6  ;;  %v59_v13 = vld [vmem:[#allocation4 + $0x20] sm:$0xff]  ;;  %v44_v14 = vld [vmem:[#allocation2 + $0x28] sm:$0xff] }
  0x29   :  { %103 = vst [vmem:[%s288_s2] sm:$0xff] %v87_v7  ;;  %v89_v12 = vsel %vm73_vm2, 1, %v182_v6  ;;  %vm74_vm3 = vcmp.lt.f32.partialorder %v42_v8, %v58_v9  ;;  %v60_v15 = vld [vmem:[#allocation4 + $0x28] sm:$0xff]  ;;  %104 = vst [vmem:[%s288_s2 + $0x8] sm:$0xff] %v88_v11  ;;  %vm75_vm4 = vcmp.lt.f32.partialorder %v43_v10, %v59_v13  ;;  %v45_v17 = vld [vmem:[#allocation2 + $0x30] sm:$0xff] }
  0x2a   :  { %105 = vst [vmem:[%s288_s2 + $0x10] sm:$0xff] %v89_v12  ;;  %v90_v16 = vsel %vm74_vm3, 1, %v182_v6  ;;  %vm76_vm5 = vcmp.lt.f32.partialorder %v44_v14, %v60_v15  ;;  %v61_v18 = vld [vmem:[#allocation4 + $0x30] sm:$0xff]  ;;  %v46_v19 = vld [vmem:[#allocation2 + $0x38] sm:$0xff]  ;;  %v91_v20 = vsel %vm75_vm4, 1, %v182_v6  ;;  %v47_v23 = vld [vmem:[#allocation2 + $0x40] sm:$0xff] }
  0x2b   :  { %106 = vst [vmem:[%s288_s2 + $0x18] sm:$0xff] %v90_v16  ;;  %v92_v21 = vsel %vm76_vm5, 1, %v182_v6  ;;  %vm77_vm6 = vcmp.lt.f32.partialorder %v45_v17, %v61_v18  ;;  %v62_v22 = vld [vmem:[#allocation4 + $0x38] sm:$0xff]  ;;  %v63_v24 = vld [vmem:[#allocation4 + $0x40] sm:$0xff]  ;;  %107 = vst [vmem:[%s288_s2 + $0x20] sm:$0xff] %v91_v20 }
  0x2c   :  { %108 = vst [vmem:[%s288_s2 + $0x28] sm:$0xff] %v92_v21  ;;  %v93_v25 = vsel %vm77_vm6, 1, %v182_v6  ;;  %vm78_vm7 = vcmp.lt.f32.partialorder %v46_v19, %v62_v22  ;;  %vm79_vm8 = vcmp.lt.f32.partialorder %v47_v23, %v63_v24  ;;  %v48_v26 = vld [vmem:[#allocation2 + $0x48] sm:$0xff]  ;;  %v49_v28 = vld [vmem:[#allocation2 + $0x50] sm:$0xff]  ;;  %v50_v32 = vld [vmem:[#allocation2 + $0x58] sm:$0xff] }
  0x2d   :  { %v64_v27 = vld [vmem:[#allocation4 + $0x48] sm:$0xff]  ;;  %109 = vst [vmem:[%s288_s2 + $0x30] sm:$0xff] %v93_v25  ;;  %v94_v29 = vsel %vm78_vm7, 1, %v182_v6  ;;  %v95_v30 = vsel %vm79_vm8, 1, %v182_v6  ;;  %v65_v31 = vld [vmem:[#allocation4 + $0x50] sm:$0xff]  ;;  %v66_v33 = vld [vmem:[#allocation4 + $0x58] sm:$0xff] }
  0x2e   :  { %vm80_vm9 = vcmp.lt.f32.partialorder %v48_v26, %v64_v27  ;;  %110 = vst [vmem:[%s288_s2 + $0x38] sm:$0xff] %v94_v29  ;;  %111 = vst [vmem:[%s288_s2 + $0x40] sm:$0xff] %v95_v30  ;;  %vm81_vm10 = vcmp.lt.f32.partialorder %v49_v28, %v65_v31  ;;  %vm82_vm11 = vcmp.lt.f32.partialorder %v50_v32, %v66_v33  ;;  %v51_v35 = vld [vmem:[#allocation2 + $0x60] sm:$0xff]  ;;  %v52_v37 = vld [vmem:[#allocation2 + $0x68] sm:$0xff] }
  0x2f   :  { %v96_v34 = vsel %vm80_vm9, 1, %v182_v6  ;;  %v67_v36 = vld [vmem:[#allocation4 + $0x60] sm:$0xff]  ;;  %v97_v38 = vsel %vm81_vm10, 1, %v182_v6  ;;  %v98_v39 = vsel %vm82_vm11, 1, %v182_v6  ;;  %v68_v40 = vld [vmem:[#allocation4 + $0x68] sm:$0xff]  ;;  %v53_v41 = vld [vmem:[#allocation2 + $0x70] sm:$0xff] }
  0x30   :  { %112 = vst [vmem:[%s288_s2 + $0x48] sm:$0xff] %v96_v34  ;;  %vm83_vm12 = vcmp.lt.f32.partialorder %v51_v35, %v67_v36  ;;  %v69_v42 = vld [vmem:[#allocation4 + $0x70] sm:$0xff]  ;;  %113 = vst [vmem:[%s288_s2 + $0x50] sm:$0xff] %v97_v38  ;;  %vm84_vm13 = vcmp.lt.f32.partialorder %v52_v37, %v68_v40  ;;  %v54_v44 = vld [vmem:[#allocation2 + $0x78] sm:$0xff] }
  0x31   :  { %114 = vst [vmem:[%s288_s2 + $0x58] sm:$0xff] %v98_v39  ;;  %v99_v43 = vsel %vm83_vm12, 1, %v182_v6  ;;  %vm85_vm14 = vcmp.lt.f32.partialorder %v53_v41, %v69_v42  ;;  %v70_v45 = vld [vmem:[#allocation4 + $0x78] sm:$0xff]  ;;  %v100_v46 = vsel %vm84_vm13, 1, %v182_v6 }
  0x32   :  { %115 = vst [vmem:[%s288_s2 + $0x60] sm:$0xff] %v99_v43  ;;  %v101_v47 = vsel %vm85_vm14, 1, %v182_v6  ;;  %vm86_vm15 = vcmp.lt.f32.partialorder %v54_v44, %v70_v45  ;;  %116 = vst [vmem:[%s288_s2 + $0x68] sm:$0xff] %v100_v46 }
  0x33   :  { %117 = vst [vmem:[%s288_s2 + $0x70] sm:$0xff] %v101_v47  ;;  %v102_v48 = vsel %vm86_vm15, 1, %v182_v6 }
  0x34   :  { %118 = vst [vmem:[%s288_s2 + $0x78] sm:$0xff] %v102_v48 }
  0x35   :  { %123 = vsyncpa [#allocation3], 1 }
  0x36   :  { %124 = vsyncpa [#allocation5], 1 }

// kernel: tpu_custom_call.1
= control target key start
LH: loop header
LB: loop body
LE: loop exit
PB: predicated region body
PF: predicated region fallthrough
CT: control target
= control target key end

     0   :  { %7 = vsyncpa [#allocation3], 0  ;;  %s261_s0 = inlined_call_operand.hbm [shape: f32[32,512], index: 0, kind: input, shape index: {}]   ;;  %s262_s1 = inlined_call_operand.hbm [shape: f32[32,512], index: 1, kind: input, shape index: {}]   ;;  %s263_s2 = inlined_call_operand.hbm [shape: u8[32,512], index: 2, kind: output, shape index: {}]  }
   0x1   :  { %8 = vsyncpa [#allocation6], 0 }
   0x2   :  { %9 = vsyncpa [#allocation4], 0  ;;  %s204_s9 = smov [#allocation2]   ;;  %s132_s13 = scalar_lea.hbm %s261_s0, 2048 }
   0x3   :  { %s15_s10 = sshll.u32 %s204_s9, 4  ;;  %p133_p0 = scmp.ne.s32.totalorder %s261_s0, %s132_s13  ;;  %s16_s10 = int_to_ptr.vmem [resolvable:$true] %s15_s10 }
   0x4   :  { %p136_p1 = scmp.lt.u32.totalorder %s132_s13, %s261_s0 }
   0x6   :  { %p138_p2 = pnand %p136_p1, %p133_p0 }
   0x8   :  { %141 = shalt.err (!%p138_p2)
}
   0x9   :  { %s142_s18 = scalar_lea.vmem %s16_s10, 2048  ;;  %p147_p4 = scmp.lt.s32.totalorder %s16_s10, %s16_s10 }
   0xa   :  { %p143_p3 = scmp.ne.s32.totalorder %s16_s10, %s142_s18  ;;  %p148_p5 = scmp.lt.s32.totalorder %s142_s18, %s142_s18 }
   0xc   :  { %p149_p6 = por %p148_p5, %p147_p4 }
   0xe   :  { %p150_p7 = pnand %p149_p6, %p143_p3 }
  0x10   :  { %153 = shalt.err (!%p150_p7)
}
  0x11   :  { %s205_s19 = smov 512   ;;  %s206_s20 = smov 32  }
  0x12   :  { %21 = dma.hbm_to_vmem [thread:$0]  %s261_s0, 2048, %s16_s10, [#allocation3], %s205_s19, %s205_s19, %s206_s20  }
  0x13   :  { %s207_s23 = smov [#allocation5]   ;;  %s154_s27 = scalar_lea.hbm %s262_s1, 2048 }
  0x14   :  { %s27_s24 = sshll.u32 %s207_s23, 4  ;;  %p155_p8 = scmp.ne.s32.totalorder %s262_s1, %s154_s27  ;;  %s28_s24 = int_to_ptr.vmem [resolvable:$true] %s27_s24 }
  0x15   :  { %p158_p9 = scmp.lt.u32.totalorder %s154_s27, %s262_s1 }
  0x17   :  { %p160_p10 = pnand %p158_p9, %p155_p8 }
  0x19   :  { %163 = shalt.err (!%p160_p10)
}
  0x1a   :  { %s164_s4 = scalar_lea.vmem %s28_s24, 2048  ;;  %p169_p12 = scmp.lt.s32.totalorder %s28_s24, %s28_s24 }
  0x1b   :  { %p165_p11 = scmp.ne.s32.totalorder %s28_s24, %s164_s4  ;;  %p170_p13 = scmp.lt.s32.totalorder %s164_s4, %s164_s4 }
  0x1d   :  { %p171_p0 = por %p170_p13, %p169_p12 }
  0x1f   :  { %p172_p1 = pnand %p171_p0, %p165_p11 }
  0x21   :  { %175 = shalt.err (!%p172_p1)
}
  0x22   :  { %33 = dma.hbm_to_vmem [thread:$0]  %s262_s1, 2048, %s28_s24, [#allocation6], %s205_s19, %s205_s19, %s206_s20  }
  0x23   :  { %198 = dma.done.wait [#allocation3], 2048  }
  0x24   :  { %199 = vsyncadd [#allocation3], 4294965248 }
  0x25   :  { %200 = dma.done.wait [#allocation6], 2048  }
  0x26   :  { %201 = vsyncadd [#allocation6], 4294965248  ;;  %v42_v0 = vld [vmem:[#allocation2] sm:$0xff]  ;;  %v43_v8 = vld [vmem:[#allocation2 + $0x8] sm:$0xff]  ;;  %v208_v15 = vmov 0   ;;  %s209_s1 = smov [#allocation7]  }
  0x27   :  { %v46_v1 = vld [vmem:[#allocation2 + $0x20] sm:$0xff]  ;;  %v47_v9 = vld [vmem:[#allocation2 + $0x28] sm:$0xff]  ;;  %v44_v18 = vld [vmem:[#allocation2 + $0x10] sm:$0xff]  ;;  %s116_s6 = sshll.u32 %s209_s1, 4  ;;  %s117_s6 = int_to_ptr.vmem [resolvable:$true] %s116_s6 }
  0x28   :  { %v50_v2 = vld [vmem:[#allocation2 + $0x40] sm:$0xff]  ;;  %v51_v10 = vld [vmem:[#allocation2 + $0x48] sm:$0xff]  ;;  %v48_v19 = vld [vmem:[#allocation2 + $0x30] sm:$0xff]  ;;  %s176_s7 = scalar_lea.vmem %s117_s6, 512  ;;  %p181_p3 = scmp.lt.s32.totalorder %s117_s6, %s117_s6 }
  0x29   :  { %v54_v3 = vld [vmem:[#allocation2 + $0x60] sm:$0xff]  ;;  %v55_v11 = vld [vmem:[#allocation2 + $0x68] sm:$0xff]  ;;  %v52_v20 = vld [vmem:[#allocation2 + $0x50] sm:$0xff]  ;;  %p177_p2 = scmp.ne.s32.totalorder %s117_s6, %s176_s7  ;;  %p182_p4 = scmp.lt.s32.totalorder %s176_s7, %s176_s7 }
  0x2a   :  { %v58_v4 = vld [vmem:[#allocation5] sm:$0xff]  ;;  %v59_v12 = vld [vmem:[#allocation5 + $0x8] sm:$0xff]  ;;  %v56_v21 = vld [vmem:[#allocation2 + $0x70] sm:$0xff] }
  0x2b   :  { %v62_v5 = vld [vmem:[#allocation5 + $0x20] sm:$0xff]  ;;  %vm74_vm0 = vcmp.lt.f32.partialorder %v42_v0, %v58_v4  ;;  %v63_v13 = vld [vmem:[#allocation5 + $0x28] sm:$0xff]  ;;  %vm75_vm7 = vcmp.lt.f32.partialorder %v43_v8, %v59_v12  ;;  %v60_v22 = vld [vmem:[#allocation5 + $0x10] sm:$0xff]  ;;  %p183_p5 = por %p182_p4, %p181_p3 }
  0x2c   :  { %v66_v6 = vld [vmem:[#allocation5 + $0x40] sm:$0xff]  ;;  %vm78_vm1 = vcmp.lt.f32.partialorder %v46_v1, %v62_v5  ;;  %v67_v14 = vld [vmem:[#allocation5 + $0x48] sm:$0xff]  ;;  %vm79_vm8 = vcmp.lt.f32.partialorder %v47_v9, %v63_v13  ;;  %v64_v23 = vld [vmem:[#allocation5 + $0x30] sm:$0xff]  ;;  %vm76_vm14 = vcmp.lt.f32.partialorder %v44_v18, %v60_v22 }
  0x2d   :  { %v70_v7 = vld [vmem:[#allocation5 + $0x60] sm:$0xff]  ;;  %vm82_vm2 = vcmp.lt.f32.partialorder %v50_v2, %v66_v6  ;;  %vm90_vm4 = vmpackc.low %vm78_vm1, %vm74_vm0  ;;  %v71_v17 = vld [vmem:[#allocation5 + $0x68] sm:$0xff]  ;;  %vm83_vm9 = vcmp.lt.f32.partialorder %v51_v10, %v67_v14  ;;  %vm80_vm15 = vcmp.lt.f32.partialorder %v48_v19, %v64_v23  ;;  %p184_p6 = pnand %p183_p5, %p177_p2 }
  0x2e   :  { %vm86_vm3 = vcmp.lt.f32.partialorder %v54_v3, %v70_v7  ;;  %vm87_vm10 = vcmp.lt.f32.partialorder %v55_v11, %v71_v17  ;;  %vm93_vm11 = vmpackc.low %vm79_vm8, %vm75_vm7  ;;  %v68_v24 = vld [vmem:[#allocation5 + $0x50] sm:$0xff]  ;;  %v45_v27 = vld [vmem:[#allocation2 + $0x18] sm:$0xff] }
  0x2f   :  { %vm91_vm5 = vmpackc.low %vm86_vm3, %vm82_vm2  ;;  %v72_v25 = vld [vmem:[#allocation5 + $0x70] sm:$0xff]  ;;  %vm84_vm0 = vcmp.lt.f32.partialorder %v52_v20, %v68_v24  ;;  %v49_v28 = vld [vmem:[#allocation2 + $0x38] sm:$0xff] }
  0x30   :  { %vm92_vm6 = vmpackc.even %vm91_vm5, %vm90_vm4  ;;  %vm88_vm1 = vcmp.lt.f32.partialorder %v56_v21, %v72_v25  ;;  %v53_v29 = vld [vmem:[#allocation2 + $0x58] sm:$0xff] }
  0x31   :  { %v102_v16 = vsel %vm92_vm6, 16843009, %v208_v15  ;;  %vm94_vm12 = vmpackc.low %vm87_vm10, %vm83_vm9  ;;  %v57_v30 = vld [vmem:[#allocation2 + $0x78] sm:$0xff] }
  0x32   :  { %106 = vst [vmem:[#allocation7] sm:$0xff] %v102_v16  ;;  %vm95_vm13 = vmpackc.even %vm94_vm12, %vm93_vm11  ;;  %v61_v31 = vld [vmem:[#allocation5 + $0x18] sm:$0xff] }
  0x33   :  { %v103_v26 = vsel %vm95_vm13, 16843009, %v208_v15  ;;  %vm96_vm2 = vmpackc.low %vm80_vm15, %vm76_vm14  ;;  %v65_v32 = vld [vmem:[#allocation5 + $0x38] sm:$0xff]  ;;  %vm77_vm5 = vcmp.lt.f32.partialorder %v45_v27, %v61_v31 }
  0x34   :  { %107 = vst [vmem:[#allocation7 + $0x8] sm:$0xff] %v103_v26  ;;  %vm97_vm3 = vmpackc.low %vm88_vm1, %vm84_vm0  ;;  %v69_v34 = vld [vmem:[#allocation5 + $0x58] sm:$0xff]  ;;  %vm81_vm6 = vcmp.lt.f32.partialorder %v49_v28, %v65_v32 }
  0x35   :  { %vm98_vm4 = vmpackc.even %vm97_vm3, %vm96_vm2  ;;  %v73_v35 = vld [vmem:[#allocation5 + $0x78] sm:$0xff]  ;;  %vm85_vm7 = vcmp.lt.f32.partialorder %v53_v29, %v69_v34 }
  0x36   :  { %v104_v33 = vsel %vm98_vm4, 16843009, %v208_v15  ;;  %vm89_vm8 = vcmp.lt.f32.partialorder %v57_v30, %v73_v35  ;;  %vm99_vm9 = vmpackc.low %vm81_vm6, %vm77_vm5 }
  0x37   :  { %108 = vst [vmem:[#allocation7 + $0x10] sm:$0xff] %v104_v33  ;;  %vm100_vm10 = vmpackc.low %vm89_vm8, %vm85_vm7 }
  0x38   :  { %vm101_vm11 = vmpackc.even %vm100_vm10, %vm99_vm9 }
  0x39   :  { %v105_v36 = vsel %vm101_vm11, 16843009, %v208_v15 }
  0x3a   :  { %109 = vst [vmem:[#allocation7 + $0x18] sm:$0xff] %v105_v36 }
  0x3b   :  { %187 = shalt.err (!%p184_p6)
}
  0x3c   :  { %s188_s10 = scalar_lea.hbm %s263_s2, 512 }
  0x3d   :  { %p189_p7 = scmp.ne.s32.totalorder %s263_s2, %s188_s10  ;;  %p192_p8 = scmp.lt.u32.totalorder %s188_s10, %s263_s2 }
  0x3f   :  { %p194_p9 = pnand %p192_p8, %p189_p7 }
  0x41   :  { %197 = shalt.err (!%p194_p9)
}
  0x42   :  { %119 = dma.vmem_to_hbm [thread:$0]  %s117_s6, 512, %s263_s2, [#allocation4]  }
  0x43   :  { %202 = dma.done.wait [#allocation4], 512  }
  0x44   :  { %203 = vsyncadd [#allocation4], 4294966784 }
  0x45   :  { %123 = vsyncpa [#allocation3], 1 }
  0x46   :  { %124 = vsyncpa [#allocation6], 1 }
  0x47   :  { %125 = vsyncpa [#allocation4], 1 }

</bundles_post_ra>
